<compile_context>
chip_gen: v5e
topology: v5e:2x2
jax: 0.10.0
libtpu: 0.0.40
codegen_flags: <defaults>
</compile_context>

<pallas_src>
import jax
import jax.numpy as jnp
from jax.experimental import pallas as pl
from jax.experimental.pallas import tpu as pltpu


def _round_up(n, m):
    return ((n + m - 1) // m) * m


def _make_kernel(rem):
    """rem = HW % tile (static Python int). rem != 0 implies >= 2 HW steps."""

    def kernel(x_ref, w1_ref, w2_ref, o_ref, acc_ref):
        # x_ref  : (1, bb, C, tile)   one (batch-block, HW-tile) chunk
        # w1_ref : (Cr, C)            resident in VMEM across the grid
        # w2_ref : (C, Cr)            resident in VMEM across the grid
        # o_ref  : (1, bb, C)         sigmoid(fc2(relu(fc1(maxpool))))
        # acc_ref: (bb, C, tile)      running elementwise max (input dtype)
        k = pl.program_id(1)
        last = pl.num_programs(1) - 1
        chunk = x_ref[0]                                    # (bb, C, tile)

        @pl.when(k == 0)
        def _init():
            # First chunk initializes every lane; no -inf fill needed.
            acc_ref[...] = chunk

        if rem:
            @pl.when(jnp.logical_and(k != 0, k != last))
            def _steady():
                acc_ref[...] = jnp.maximum(acc_ref[...], chunk)

            @pl.when(k == last)
            def _tail():
                # Mask the out-of-bounds lanes of the final (partial) HW tile.
                lane = jax.lax.broadcasted_iota(jnp.int32, chunk.shape, 2)
                neg = jnp.asarray(-jnp.inf, dtype=chunk.dtype)
                acc_ref[...] = jnp.maximum(
                    acc_ref[...], jnp.where(lane < rem, chunk, neg))
        else:
            @pl.when(k != 0)
            def _steady():
                acc_ref[...] = jnp.maximum(acc_ref[...], chunk)

        @pl.when(k == last)
        def _finalize():
            # Single cross-lane (XLU) reduce per batch block + fused tiny MLP.
            pooled = jnp.max(acc_ref[...], axis=-1)         # (bb, C)
            pooled = pooled.astype(w1_ref.dtype)
            hidden = jax.lax.dot_general(                   # pooled @ w1.T
                pooled, w1_ref[...],
                dimension_numbers=(((1,), (1,)), ((), ())),
                preferred_element_type=jnp.float32)
            hidden = jnp.maximum(hidden, 0.0)               # ReLU
            logits = jax.lax.dot_general(                   # hidden @ w2.T
                hidden.astype(w2_ref.dtype), w2_ref[...],
                dimension_numbers=(((1,), (1,)), ((), ())),
                preferred_element_type=jnp.float32)
            o_ref[0] = jax.nn.sigmoid(logits).astype(o_ref.dtype)

    return kernel


def channel_attention(x, w1, w2, *, lane_tile_target=2048,
                      block_bytes_target=6 * 1024 * 1024):
    """x: (B, C, H, W); w1: (C//r, C); w2: (C, C//r). Returns (B, C, 1, 1)."""
    B, C, H, W = x.shape
    Cr = w1.shape[0]
    assert w1.shape == (Cr, C) and w2.shape == (C, Cr)
    HW = H * W
    itemsize = jnp.dtype(x.dtype).itemsize

    # ---- HW lane tile: full HW if it fits the budget, else a multiple of ----
    # ---- 128 strictly smaller than HW (tail handled in-kernel).         ----
    budget_tile = max(128, (block_bytes_target // (C * itemsize)) // 128 * 128)
    if HW <= budget_tile:
        tile = HW                                  # single step, no masking
    else:
        # TODO(synk): for very large C, add a channel-block grid axis instead
        # of shrinking the lane tile below ~512 elements.
        tile = max(128, min(budget_tile, _round_up(lane_tile_target, 128)))
    rem = HW % tile if tile != HW else 0
    n_k = pl.cdiv(HW, tile)

    # ---- fuse batch rows per step (~block_bytes_target), but keep the -------
    # ---- parallel batch axis >= 2 so both v7x TensorCores get work.  --------
    per_batch_bytes = C * tile * itemsize
    max_bb = max(1, B // 2) if B > 1 else 1
    bb = 1
    for d in range(1, B + 1):
        if (B % d == 0 and d <= max_bb
                and d * per_batch_bytes <= block_bytes_target):
            bb = d
    nB = B // bb

    xg = x.reshape(nB, bb, C, HW)                  # metadata reshape, no copy

    out = pl.pallas_call(
        _make_kernel(rem),
        out_shape=jax.ShapeDtypeStruct((nB, bb, C), x.dtype),
        grid_spec=pltpu.PrefetchScalarGridSpec(
            num_scalar_prefetch=0,
            grid=(nB, n_k),
            in_specs=[
                pl.BlockSpec((1, bb, C, tile), lambda b, k: (b, 0, 0, k)),
                pl.BlockSpec((Cr, C), lambda b, k: (0, 0)),  # VMEM-resident
                pl.BlockSpec((C, Cr), lambda b, k: (0, 0)),  # VMEM-resident
            ],
            out_specs=pl.BlockSpec((1, bb, C), lambda b, k: (b, 0, 0)),
            scratch_shapes=[pltpu.VMEM((bb, C, tile), x.dtype)],
        ),
        compiler_params=pltpu.CompilerParams(
            dimension_semantics=("parallel", "arbitrary"),
            vmem_limit_bytes=48 * 1024 * 1024),
    )(xg, w1, w2)

    return out.reshape(B, C, 1, 1)


def reference(x, w1, w2):
    pooled = jnp.max(x, axis=(2, 3))                         # (B, C)
    hidden = jnp.maximum(pooled @ w1.T, 0.0)                 # (B, Cr)
    logits = hidden @ w2.T                                   # (B, C)
    return jax.nn.sigmoid(logits)[:, :, None, None]          # (B, C, 1, 1)


if __name__ == "__main__":
    ratio = 8

    key = jax.random.PRNGKey(0)
    kx, k1, k2, kx2 = jax.random.split(key, 4)

    # --- main config: B=2, C=16, 16x16 spatial (single-tile fast path) ------
    B, C, H, W = 2, 16, 16, 16
    Cr = C // ratio
    x = jax.random.normal(kx, (B, C, H, W), dtype=jnp.float32)
    w1 = jax.random.normal(k1, (Cr, C), dtype=jnp.float32) * 0.1
    w2 = jax.random.normal(k2, (C, Cr), dtype=jnp.float32) * 0.1

    out = jax.block_until_ready(channel_attention(x, w1, w2))
    ref = reference(x, w1, w2)
    assert out.shape == (B, C, 1, 1)
    assert jnp.allclose(out, ref, atol=1e-5, rtol=1e-5), "mismatch (main)"

    # --- second config: ragged HW to exercise the in-kernel tail masking ----
    H2, W2 = 10, 13                                          # HW = 130
    x2 = jax.random.normal(kx2, (B, C, H2, W2), dtype=jnp.float32)
    out2 = jax.block_until_ready(
        channel_attention(x2, w1, w2,
                          lane_tile_target=128,
                          block_bytes_target=C * 128 * 4))   # force tile=128
    ref2 = reference(x2, w1, w2)
    assert jnp.allclose(out2, ref2, atol=1e-5, rtol=1e-5), "mismatch (tail)"

    print("KERNEL_OK")
</pallas_src>

<mosaic_0001>
module attributes {stable_mosaic.version = 11 : i64} {
  func.func @kernel(%arg0: i32, %arg1: i32, %arg2: memref<1x1x16x256xf32, #tpu.memory_space<vmem>>, %arg3: memref<2x16xf32, #tpu.memory_space<vmem>>, %arg4: memref<16x2xf32, #tpu.memory_space<vmem>>, %arg5: memref<1x1x16xf32, #tpu.memory_space<vmem>>, %arg6: memref<1x16x256xf32, #tpu.memory_space<vmem>>) attributes {dimension_semantics = [#tpu.dimension_semantics<parallel>, #tpu.dimension_semantics<arbitrary>], iteration_bounds = array<i64: 2, 1>, scalar_prefetch = 0 : i64, scratch_operands = 1 : i64, tpu.core_type = #tpu.core_type<tc>, window_params = [{transform_indices = @transform_0, window_bounds = array<i64: 1, 1, 16, 256>}, {pipeline_mode = #tpu.pipeline_mode<synchronous>, transform_indices = @transform_1, window_bounds = array<i64: 2, 16>}, {pipeline_mode = #tpu.pipeline_mode<synchronous>, transform_indices = @transform_2, window_bounds = array<i64: 16, 2>}, {transform_indices = @transform_3, window_bounds = array<i64: 1, 1, 16>}]} {
    %c0 = arith.constant 0 : index
    %c0_0 = arith.constant 0 : index
    %c0_1 = arith.constant 0 : index
    %c0_2 = arith.constant 0 : index
    %0 = vector.load %arg2[%c0, %c0_0, %c0_1, %c0_2] : memref<1x1x16x256xf32, #tpu.memory_space<vmem>>, vector<1x1x16x256xf32>
    %1 = vector.shape_cast %0 : vector<1x1x16x256xf32> to vector<1x16x256xf32>
    %c0_i32 = arith.constant 0 : i32
    %2 = arith.cmpi eq, %arg1, %c0_i32 : i32
    %3 = arith.extui %2 : i1 to i32
    %c0_i32_3 = arith.constant 0 : i32
    %4 = arith.cmpi ne, %3, %c0_i32_3 : i32
    scf.if %4 {
      %c0_8 = arith.constant 0 : index
      %c0_9 = arith.constant 0 : index
      %c0_10 = arith.constant 0 : index
      %11 = vector.load %arg6[%c0_8, %c0_9, %c0_10] : memref<1x16x256xf32, #tpu.memory_space<vmem>>, vector<1x16x256xf32>
      tpu.vector_store %arg6[%c0_8, %c0_9, %c0_10], %1 {strides = array<i32>} : memref<1x16x256xf32, #tpu.memory_space<vmem>>, vector<1x16x256xf32>,
    } else {
    }
    %c0_i32_4 = arith.constant 0 : i32
    %5 = arith.cmpi ne, %arg1, %c0_i32_4 : i32
    %6 = arith.extui %5 : i1 to i32
    %c0_i32_5 = arith.constant 0 : i32
    %7 = arith.cmpi ne, %6, %c0_i32_5 : i32
    scf.if %7 {
      %c0_8 = arith.constant 0 : index
      %c0_9 = arith.constant 0 : index
      %c0_10 = arith.constant 0 : index
      %11 = vector.load %arg6[%c0_8, %c0_9, %c0_10] : memref<1x16x256xf32, #tpu.memory_space<vmem>>, vector<1x16x256xf32>
      %12 = arith.maximumf %11, %1 : vector<1x16x256xf32>
      %c0_11 = arith.constant 0 : index
      %c0_12 = arith.constant 0 : index
      %c0_13 = arith.constant 0 : index
      %13 = vector.load %arg6[%c0_11, %c0_12, %c0_13] : memref<1x16x256xf32, #tpu.memory_space<vmem>>, vector<1x16x256xf32>
      tpu.vector_store %arg6[%c0_11, %c0_12, %c0_13], %12 {strides = array<i32>} : memref<1x16x256xf32, #tpu.memory_space<vmem>>, vector<1x16x256xf32>,
    } else {
    }
    %c0_i32_6 = arith.constant 0 : i32
    %8 = arith.cmpi eq, %arg1, %c0_i32_6 : i32
    %9 = arith.extui %8 : i1 to i32
    %c0_i32_7 = arith.constant 0 : i32
    %10 = arith.cmpi ne, %9, %c0_i32_7 : i32
    scf.if %10 {
      %c0_8 = arith.constant 0 : index
      %c0_9 = arith.constant 0 : index
      %c0_10 = arith.constant 0 : index
      %11 = vector.load %arg6[%c0_8, %c0_9, %c0_10] : memref<1x16x256xf32, #tpu.memory_space<vmem>>, vector<1x16x256xf32>
      %cst = arith.constant dense<0xFF800000> : vector<1x16xf32>
      %12 = vector.multi_reduction <maximumf>, %11, %cst [2] : vector<1x16x256xf32> to vector<1x16xf32>
      %c0_11 = arith.constant 0 : index
      %c0_12 = arith.constant 0 : index
      %13 = vector.load %arg3[%c0_11, %c0_12] : memref<2x16xf32, #tpu.memory_space<vmem>>, vector<2x16xf32>
      %cst_13 = arith.constant dense<0.000000e+00> : vector<1x2xf32>
      %14 = tpu.matmul %12, %13, %cst_13 {dimension_numbers = #tpu.dot_dimension_numbers<[1], [1], [0], [0], [0, 0, 1, 0], [], []>} : vector<1x16xf32>, vector<2x16xf32>, vector<1x2xf32> -> vector<1x2xf32>
      %cst_14 = arith.constant 0.000000e+00 : f32
      %15 = vector.broadcast %cst_14 : f32 to vector<1x2xf32>
      %16 = arith.maximumf %14, %15 : vector<1x2xf32>
      %c0_15 = arith.constant 0 : index
      %c0_16 = arith.constant 0 : index
      %17 = vector.load %arg4[%c0_15, %c0_16] : memref<16x2xf32, #tpu.memory_space<vmem>>, vector<16x2xf32>
      %cst_17 = arith.constant dense<0.000000e+00> : vector<1x16xf32>
      %18 = tpu.matmul %16, %17, %cst_17 {dimension_numbers = #tpu.dot_dimension_numbers<[1], [1], [0], [0], [0, 0, 1, 0], [], []>} : vector<1x2xf32>, vector<16x2xf32>, vector<1x16xf32> -> vector<1x16xf32>
      %19 = arith.negf %18 : vector<1x16xf32>
      %20 = math.exp %19 : vector<1x16xf32>
      %cst_18 = arith.constant 1.000000e+00 : f32
      %21 = vector.broadcast %cst_18 : f32 to vector<1x16xf32>
      %22 = arith.addf %21, %20 : vector<1x16xf32>
      %23 = arith.divf %21, %22 : vector<1x16xf32>
      %c0_19 = arith.constant 0 : index
      %c0_20 = arith.constant 0 : index
      %c0_21 = arith.constant 0 : index
      %24 = vector.load %arg5[%c0_19, %c0_20, %c0_21] : memref<1x1x16xf32, #tpu.memory_space<vmem>>, vector<1x1x16xf32>
      %25 = vector.shape_cast %24 : vector<1x1x16xf32> to vector<1x16xf32>
      %26 = vector.shape_cast %23 : vector<1x16xf32> to vector<1x1x16xf32>
      tpu.vector_store %arg5[%c0_19, %c0_20, %c0_21], %26 {strides = array<i32>} : memref<1x1x16xf32, #tpu.memory_space<vmem>>, vector<1x1x16xf32>,
    } else {
    }
    return
  }
  func.func @transform_0(%arg0: i32, %arg1: i32) -> (i32, i32, i32, i32) {
    %c0_i32 = arith.constant 0 : i32
    %c0_i32_0 = arith.constant 0 : i32
    %c0_i32_1 = arith.constant 0 : i32
    return %arg0, %c0_i32, %c0_i32_0, %arg1 : i32, i32, i32, i32
  }
  func.func @transform_1(%arg0: i32, %arg1: i32) -> (i32, i32) {
    %c0_i32 = arith.constant 0 : i32
    %c0_i32_0 = arith.constant 0 : i32
    %c0_i32_1 = arith.constant 0 : i32
    return %c0_i32, %c0_i32_0 : i32, i32
  }
  func.func @transform_2(%arg0: i32, %arg1: i32) -> (i32, i32) {
    %c0_i32 = arith.constant 0 : i32
    %c0_i32_0 = arith.constant 0 : i32
    %c0_i32_1 = arith.constant 0 : i32
    return %c0_i32, %c0_i32_0 : i32, i32
  }
  func.func @transform_3(%arg0: i32, %arg1: i32) -> (i32, i32, i32) {
    %c0_i32 = arith.constant 0 : i32
    %c0_i32_0 = arith.constant 0 : i32
    %c0_i32_1 = arith.constant 0 : i32
    return %arg0, %c0_i32, %c0_i32_0 : i32, i32, i32
  }
}

</mosaic_0001>

<bundles_post_ra>
// kernel: tpu_custom_call.1
= control target key start
LH: loop header
LB: loop body
LE: loop exit
PB: predicated region body
PF: predicated region fallthrough
CT: control target
= control target key end

     0   :  { %8 = vsyncpa [#allocation4], 0  ;;  %s783_s0 = inlined_call_operand.hbm [shape: f32[2,1,16,256], index: 0, kind: input, shape index: {}]   ;;  %s784_s1 = inlined_call_operand.vmem [shape: f32[2,16], index: 1, kind: input, shape index: {}]   ;;  %s785_s2 = inlined_call_operand.vmem [shape: f32[16,2], index: 2, kind: input, shape index: {}]   ;;  %s786_s3 = inlined_call_operand.hbm [shape: f32[2,1,16], index: 3, kind: output, shape index: {}]  }
   0x1   :  { %10 = vsyncpa [#allocation4 + $0x1], 0 }
   0x2   :  { %11 = vsyncpa [#allocation5], 0 }
   0x3   :  { %13 = vsyncpa [#allocation5 + $0x1], 0  ;;  %s650_s12 = smov 0   ;;  %s652_s13 = smov 0  }
   0x4   :  { %s654_s14 = smov 0   ;;  %s656_s15 = smov 0  }
   0x5   :  { %s658_s16 = smov 0   ;;  %s660_s17 = smov 0  }
   0x6 LB: > { %s428_s18 = sadd.s32 4294967295, %s626_s17   ;;  %s429_s19 = sadd.s32 4294967294, %s626_s17   ;;  %s626_s17 = sphi %s660_s17, %s19_s17   ;;  %s622_s16 = sphi %s658_s16, %s795_s16   ;;  %s618_s15 = sphi %s656_s15, %s794_s15   ;;  %s614_s14 = sphi %s654_s14, %s793_s14   ;;  %s610_s13 = sphi %s652_s13, %s792_s13   ;;  %s606_s12 = sphi %s650_s12, %s791_s12  }
   0x7   : > { %s31_s20 = sadd.s32 1, %s622_s16  ;;  %s40_s21 = sadd.s32 1, %s614_s14 }
   0x8   : > { %p33_p0 = scmp.ge.s32.totalorder %s31_s20, 2  ;;  %p47_p1 = scmp.ne.s32.totalorder %s614_s14, %s610_s13 }
   0x9   : > { %p48_p2 = scmp.eq.s32.totalorder %s626_s17, 0  ;;  %p53_p3 = scmp.ne.s32.totalorder %s610_s13, %s606_s12 }
   0xa   : > { %s797_s20 = smov (%p33_p0, %s31_s20), 0  ;;  %p54_p5 = scmp.eq.s32.totalorder %s428_s18, 0 }
   0xb   : > { %p691_p4 = por %p48_p2, %p47_p1  ;;  %s35_s23 = ssub.s32 %s622_s16, %s797_s20 }
   0xc   : > { %p119_p6 = scmp.eq.s32.totalorder %s428_s18, 1  ;;  %p38_p7 = scmp.eq.s32.totalorder %s35_s23, 0 }
   0xd   : > { %p697_p8 = por %p54_p5, %p53_p3  ;;  %p125_p10 = scmp.eq.s32.totalorder %s429_s19, 1 }
   0xe   : > { %p701_p9 = por %p119_p6, %p47_p1  ;;  %p431_p12 = scmp.ge.s32.totalorder %s626_s17, 2 }
   0xf   : > { %s706_s26 = scalar_select %p38_p7, %s614_s14, %s40_s21  }
  0x10   : > { %p708_p11 = por %p125_p10, %p53_p3  ;;  %p458_p13 = scmp.lt.s32.totalorder %s626_s17, 2 }
  0x11   : > { %s151_s28 = sand.u32 1, %s614_s14   ;;  %s445_s30 = sshll.u32 %s622_s16, 5 }
  0x12   : > { %s432_s29 = sshll.u32 %s151_s28, 5  ;;  %s162_s6 = scalar_lea.hbm %s783_s0, %s445_s30 }
  0x13   : > { %s155_s7 = scalar_lea.vmem [#allocation3], %s432_s29  ;;  %s163_s9 = sshll.u32 %s162_s6, 4  ;;  %s164_s9 = int_to_ptr.hbm [resolvable:$true] %s163_s9 }
  0x14   : > { %s165_s8 = sshll.u32 %s155_s7, 4  ;;  %p451_p0 = pnand %p458_p13, %p691_p4  ;;  %s166_s8 = int_to_ptr.vmem [resolvable:$true] %s165_s8 }
  0x15   : > { %p435_p1 = scmp.ge.s32.totalorder %s626_s17, 1  ;;  %s152_s10 = scalar_lea.sflag [#allocation4], %s151_s28 }
  0x16   : > { %s628_s11 = smov 256   ;;  %s629_s18 = smov 16  }
  0x17   : > { %453 = dma.hbm_to_vmem [thread:$0]  (!%p451_p0), %s164_s9, 512, %s166_s8, %s152_s10, %s628_s11, %s628_s11, %s629_s18  }
  0x18   : > { %p173_p2 = scmp.lt.s32.totalorder %s626_s17, 3 }
  0x1a   : > { %p174_p3 = pnand %p435_p1, %p173_p2 }
  0x1b   : > { %s724_s19 = sand.u32 (!%p174_p3), 1, %s610_s13  }
  0x1c   : > { %177 = sbr.rel (%p174_p3) target bundleno = 449 (0x1c1), region = 32  ;;  %s436_s21 = sshll.u32 (!%p174_p3), %s724_s19, 5 }
  0x1d   : > { %s180_s23 = scalar_lea.sflag (!%p174_p3), [#allocation4], %s724_s19  ;;  %s183_s29 = scalar_lea.vmem (!%p174_p3), [#allocation3], %s436_s21 }
  0x21   : > { %597 = dma.done.wait (%p697_p8), %s180_s23, 512  }
  0x22   : > { %599 = vsyncadd (%p697_p8), %s180_s23, 4294966784  ;;  %v207_v0 = vld [vmem:[%s183_s29] sm:$0xff]  ;;  %v208_v1 = vld [vmem:[%s183_s29 + $0x8] sm:$0xff]  ;;  %vm258_vm0 = vcmask 130048   ;;  %vm287_vm1 = vcmask 15360   ;;  %v251_v8 = vlaneseq  ;;  %vm256_vm2 = vcmask 130112   ;;  %s347_s8 = scalar_lea.hbm %s786_s3, %s618_s15 }
  0x23   : > { %v242_v2 = vmax.f32 %v207_v0, %v208_v1  ;;  %v209_v3 = vld [vmem:[%s183_s29 + $0x10] sm:$0xff]  ;;  %v210_v4 = vld [vmem:[%s183_s29 + $0x18] sm:$0xff]  ;;  %v248_v6 = vld [vmem:[%s784_s1] sm:$0x3]  ;;  %s205_s9 = scalar_lea.vmem [#allocation6], %s724_s19  ;;  %s351_s11 = sshll.u32 %s347_s8, 4  ;;  %s352_s11 = int_to_ptr.hbm [resolvable:$true] %s351_s11 }
  0x24   : > { %v245_v5 = vmax.f32 %v209_v3, %v210_v4  ;;  %437 = vmatpush.xpose.msk.msra.mxu0 %vm258_vm0, %v248_v6  ;;  %v286_v7 = vld [vmem:[%s785_s2 + $0x8] sm:$0xff]  ;;  %v252_v10 = vand.u32 127, %v251_v8  ;;  %v285_v16 = vld [vmem:[%s785_s2] sm:$0xff]  ;;  %s349_s10 = sshll.u32 %s205_s9, 4  ;;  %vm336_vm6 = vcmask 122880   ;;  %s339_s15 = scalar_lea.sflag [#allocation5], %s724_s19  ;;  %s350_s10 = int_to_ptr.vmem [resolvable:$true] %s349_s10 }
  0x25   : > { %243 = vmax.xlane.f32.xlu0 %v242_v2  ;;  %439 = vmatpush.xpose.msk.msra.mxu1 %vm287_vm1, %v286_v7  ;;  %s558_s18 = sshra.s32 %s352_s11, 4  ;;  %s564_s22 = scalar_lea.hbm %s786_s3, 2  ;;  %s559_s18 = int_to_ptr.hbm [resolvable:$true] %s558_s18 }
  0x26   : > { %v254_v11 = vadd.s32 4294967288, %v252_v10  ;;  %s560_s21 = scalar_lea.hbm %s559_s18, 1  ;;  %p565_p7 = scmp.lt.s32.totalorder %s559_s18, %s786_s3 }
  0x27   : > { %p561_p4 = scmp.ne.s32.totalorder %s559_s18, %s560_s21  ;;  %p566_p8 = scmp.lt.s32.totalorder %s564_s22, %s560_s21 }
  0x29   : > { %440 = vmatpush.xpose.msk.msra.mxu1 %vm287_vm1, %v285_v16  ;;  %p562_p5 = pnand %p561_p4, %p701_p9  ;;  %p567_p10 = por %p566_p8, %p565_p7 }
  0x2b   : > { %p563_p6 = pneg %p562_p5 }
  0x2d   : > { %246 = vmax.xlane.f32.xlu0 %v245_v5  ;;  %p568_p13 = pnand %p567_p10, %p563_p6 }
  0x98   : > { %v244_v9 = vpop.xlane.xlu0 %243 }
  0x99   : > { %v253_v13 = vperm.slane %v244_v9, %v252_v10 }
  0xa0   : > { %v247_v12 = vpop.xlane.xlu0 %246 }
  0xa1   : > { %v255_v14 = vperm.slane %v247_v12, %v254_v11 }
  0xa3   : > { %v257_v15 = vsel %vm256_vm2, %v255_v14, %v253_v13 }
  0xa4   : > { %438 = vmatmul.msk.f32.vlgmr.msra.gmra.mxu0 %vm258_vm0, %v257_v15 }
 0x121   : > { %v281_v17 = vpop.f32.mrf.mxu0 }
 0x122   : > { %v284_v18 = vmax.f32 %v281_v17, 0.0 }
 0x124   : > { %441 = vmatmul.msk.f32.vlgmr.msra.gmra.mxu1 %vm287_vm1, %v284_v18 }
 0x1a1   : > { %v314_v19 = vpop.f32.mrf.mxu1 }
 0x1a2   : > { %v442_v20 = vmul.f32 -1.442695, %v314_v19 }
 0x1a4   : > { %510 = vpow2.f32 %v442_v20 }
 0x1aa   : > { %v511_v21 = vpop.eup %510 }
 0x1ab   : > { %v320_v22 = vadd.f32 1.0, %v511_v21 }
 0x1ad   : > { %512 = vrcp.f32 %v320_v22  ;;  %v332_v26 = vand.u32 2147483648, %v320_v22  ;;  %v330_v28 = vand.u32 2147483647, %v320_v22  ;;  %vm326_vm4 = vweird.f32 %v320_v22 }
 0x1af   : > { %v333_v30 = vor.u32 1.1754944e-38, %v332_v26  ;;  %vm331_vm7 = vcmp.eq.f32.partialorder %v330_v28, 8.507059e+37 }
 0x1b3   : > { %v513_v23 = vpop.eup %512 }
 0x1b4   : > { %v322_v24 = vmul.f32 %v513_v23, %v320_v22  ;;  %vm327_vm3 = vweird.f32 %v513_v23 }
 0x1b5   : > { %vm328_vm5 = vmor %vm326_vm4, %vm327_vm3 }
 0x1b6   : > { %v323_v25 = vsub.f32 1.0, %v322_v24 }
 0x1b8   : > { %v324_v27 = vmul.f32 %v513_v23, %v323_v25 }
 0x1ba   : > { %v325_v29 = vadd.f32 %v513_v23, %v324_v27 }
 0x1bc   : > { %v329_v31 = vsel %vm328_vm5, %v513_v23, %v325_v29 }
 0x1bd   : > { %v334_v32 = vsel %vm331_vm7, %v333_v30, %v329_v31 }
 0x1be   : > { %337 = vst.msk [vmem:[%s205_s9] sm:$0x1] %vm336_vm6, %v334_v32 }
 0x1bf   : > { %571 = shalt.err (!%p568_p13)
}
 0x1c0   : > { %448 = dma.vmem_to_hbm [thread:$0]  (%p701_p9), %s350_s10, 16, %s352_s11, %s339_s15  }
 0x1c1 PF: > { %s363_s19 = sand.u32 1, %s606_s12   ;;  %p455_p0 = pnand %p431_p12, %p708_p11 }
 0x1c2   : > { %s364_s4 = scalar_lea.sflag [#allocation5], %s363_s19 }
 0x1c3   : > { %p456_p1 = pneg %p455_p0 }
 0x1c5   : > { %601 = dma.done.wait (%p456_p1), %s364_s4, 16  }
 0x1c6   : > { %603 = vsyncadd (%p456_p1), %s364_s4, 4294967280  ;;  %s19_s17 = sadd.s32 1, %s626_s17   ;;  %s791_s12 = smov %s610_s13 }
 0x1c7   : > { %p16_p2 = scmp.ge.s32.totalorder %s19_s17, 4   ;;  %s792_s13 = smov %s614_s14 }
 0x1c8   : > { %s793_s14 = smov %s706_s26  ;;  %s794_s15 = smov %s622_s16 }
 0x1c9   : > { %s795_s16 = smov %s797_s20  ;;  %18 = sbr.rel (!%p16_p2) target bundleno = 6 (0x6), region = 89 }
 0x1ce   :  { %369 = vsyncpa [#allocation4], 1 }
 0x1cf   :  { %371 = vsyncpa [#allocation4 + $0x1], 1 }
 0x1d0   :  { %372 = vsyncpa [#allocation5], 1 }
 0x1d1   :  { %374 = vsyncpa [#allocation5 + $0x1], 1 }

</bundles_post_ra>
